<compile_context>
chip_gen: v6e
topology: v6e:2x2x1
jax: 0.10.0
libtpu: 0.0.40
codegen_flags: <defaults>
</compile_context>

<pallas_src>
import functools

import jax
import jax.numpy as jnp
from jax.experimental import pallas as pl
from jax.experimental.pallas import tpu as pltpu


def _cdiv(a: int, b: int) -> int:
    return -(-a // b)


def _round_up(x: int, m: int) -> int:
    return ((x + m - 1) // m) * m


def _round_down(x: int, m: int) -> int:
    return (x // m) * m


def _time_reduction_kernel(x_ref, o_ref, *, r, xlen, tail_needs_mask):
    """One (batch-tile, time-tile) block.

    x_ref : (b_tile, t_tile_out * r, H) VMEM tile of the *unpadded* input.
    o_ref : (b_tile, t_tile_out,     H) VMEM tile of the output.
    """
    b_tile, t_tile_in, hidden = x_ref.shape
    t_tile_out = o_ref.shape[1]
    ti = pl.program_id(1)
    inv_r = jnp.float32(1.0 / r)

    def compute(mask_tail):
        x = x_ref[...].astype(jnp.float32)          # (b_tile, t_tile_in, H)
        if mask_tail:
            # Rows whose global time index >= xlen act like zero padding.
            base = ti * t_tile_in
            row = jax.lax.broadcasted_iota(
                jnp.int32, (b_tile, t_tile_in, hidden), 1)
            x = jnp.where(row < (xlen - base), x, 0.0)
        x = x.reshape(b_tile, t_tile_out, r, hidden)
        return (jnp.sum(x, axis=2) * inv_r).astype(o_ref.dtype)

    if tail_needs_mask:
        last = pl.num_programs(1) - 1

        @pl.when(ti != last)
        def _():
            o_ref[...] = compute(False)

        @pl.when(ti == last)
        def _():
            o_ref[...] = compute(True)
    else:
        o_ref[...] = compute(False)


def _vmem_budget_and_limit():
    """(block-pair VMEM budget, vmem_limit_bytes) per TPU generation."""
    vmem = 64 * 1024 * 1024                       # conservative (v7x) fallback
    try:
        info = pltpu.get_tpu_info()
        cap = getattr(info, "vmem_capacity_bytes", None)
        if cap:
            vmem = int(cap)
    except Exception:
        pass
    if vmem >= 100 * 1024 * 1024:                 # v5e / v6e: 128 MiB physical
        return 24 * 1024 * 1024, 64 * 1024 * 1024
    return 10 * 1024 * 1024, 32 * 1024 * 1024     # v7x: 64 MiB physical


def _choose_tiles(batch, t_out, r, hidden, itemsize, vmem_budget):
    """Pick (b_tile, t_tile_out)."""
    # Sublane packing: 8 rows (f32), 16 (bf16/f16), 32 (int8/fp8).
    align = 8 * max(1, 4 // itemsize)
    target_traffic = 4 * 1024 * 1024              # ~4 MiB HBM traffic / step
    min_traffic = 1 * 1024 * 1024

    # Per output row (per batch row): HBM traffic and VMEM footprint.
    traffic_per_row = (r + 1) * hidden * itemsize
    vmem_per_row = (2 * (r + 1) * hidden * itemsize   # in+out, double-buffered
                    + (r + 1) * hidden * 4)           # f32 upcast temp + acc

    t_out_aligned = _round_up(t_out, align)
    rows_vmem = max(align, _round_down(vmem_budget // max(vmem_per_row, 1), align))
    rows_target = max(align, _round_down(target_traffic // max(traffic_per_row, 1), align))

    t_tile_out = max(align, min(t_out_aligned, rows_target, rows_vmem))

    # Keep several grid steps alive (megacore / both TCs) when the data is
    # large enough that splitting does not make steps overhead-dominated.
    min_steps = 8
    while (batch * _cdiv(t_out, t_tile_out) < min_steps
           and t_tile_out > align
           and t_tile_out * traffic_per_row > 2 * min_traffic):
        t_tile_out = max(align, _round_down(t_tile_out // 2, align))
    num_t_tiles = _cdiv(t_out, t_tile_out)

    # If the whole (small) time axis fits in one tile, block batch rows to
    # amortize per-step overhead, still leaving >=2 (>=8 when possible) steps.
    b_tile = 1
    if num_t_tiles == 1 and batch > 1:
        step_traffic = t_tile_out * traffic_per_row
        step_vmem = t_tile_out * vmem_per_row
        want_b = max(1, target_traffic // max(step_traffic, 1))
        vmem_b = max(1, vmem_budget // max(step_vmem, 1))
        min_bsteps = 8 if batch >= 8 else 2
        steps_b = max(1, batch // min_bsteps)
        b_tile = int(max(1, min(want_b, vmem_b, steps_b, batch)))

    return int(b_tile), int(t_tile_out)


def time_reduction(xs: jax.Array, reduction_factor: int = 2,
                   time_tile: int | None = None) -> jax.Array:
    """Pallas implementation of TimeReduction.forward.

    xs: (B, T, H) float array.  Returns (B, ceil(T/r), H).
    `time_tile` overrides the auto-picked time tile (testing only).
    """
    batch, xlen, hidden = xs.shape
    r = int(reduction_factor)
    t_out = _cdiv(xlen, r)                         # == (T + pad) // r
    itemsize = jnp.dtype(xs.dtype).itemsize
    align = 8 * max(1, 4 // itemsize)

    vmem_budget, vmem_limit = _vmem_budget_and_limit()
    if time_tile is None:
        b_tile, t_tile_out = _choose_tiles(
            batch, t_out, r, hidden, itemsize, vmem_budget)
    else:
        assert time_tile % align == 0, (
            f"time_tile must be a multiple of {align} for dtype {xs.dtype}")
        b_tile, t_tile_out = 1, int(time_tile)

    t_tile_in = t_tile_out * r
    num_b_tiles = _cdiv(batch, b_tile)
    num_t_tiles = _cdiv(t_out, t_tile_out)
    # Only the last time tile can read past the true sequence length.
    tail_needs_mask = num_t_tiles * t_tile_in > xlen

    kernel = functools.partial(
        _time_reduction_kernel, r=r, xlen=xlen,
        tail_needs_mask=tail_needs_mask)

    in_bytes = batch * xlen * hidden * itemsize
    out_bytes = batch * t_out * hidden * itemsize
    cost = pl.CostEstimate(
        flops=batch * xlen * hidden + batch * t_out * hidden,
        transcendentals=0,
        bytes_accessed=in_bytes + out_bytes)

    return pl.pallas_call(
        kernel,
        out_shape=jax.ShapeDtypeStruct((batch, t_out, hidden), xs.dtype),
        grid=(num_b_tiles, num_t_tiles),
        in_specs=[pl.BlockSpec((b_tile, t_tile_in, hidden),
                               lambda b, ti: (b, ti, 0))],
        out_specs=pl.BlockSpec((b_tile, t_tile_out, hidden),
                               lambda b, ti: (b, ti, 0)),
        compiler_params=pltpu.CompilerParams(
            dimension_semantics=("parallel", "parallel"),
            vmem_limit_bytes=vmem_limit,
        ),
        cost_estimate=cost,
    )(xs)


def _reference(xs, reduction_factor=2):
    b, t, h = xs.shape
    pad = (reduction_factor - t % reduction_factor) % reduction_factor
    xs = jnp.pad(xs, ((0, 0), (0, pad), (0, 0)))
    xs = xs.reshape(b, -1, reduction_factor, h)
    return xs.mean(axis=-2)


if __name__ == "__main__":
    key = jax.random.PRNGKey(0)

    # Case 1: small shape, odd T -> in-kernel tail masking, single tile.
    B, T, H = 2, 7, 32
    xs = jax.random.normal(key, (B, T, H), dtype=jnp.float32)
    out = jax.block_until_ready(time_reduction(xs, reduction_factor=2))
    ref = _reference(xs, reduction_factor=2)
    assert out.shape == ref.shape, (out.shape, ref.shape)
    assert jnp.allclose(out, ref, atol=1e-6, rtol=1e-6), "mismatch (case 1)"

    # Case 2: forced multi-tile time grid (tile=8 output rows), odd T again.
    xs2 = jax.random.normal(jax.random.PRNGKey(1), (2, 37, 32), jnp.float32)
    out2 = jax.block_until_ready(
        time_reduction(xs2, reduction_factor=2, time_tile=8))
    ref2 = _reference(xs2, reduction_factor=2)
    assert out2.shape == ref2.shape, (out2.shape, ref2.shape)
    assert jnp.allclose(out2, ref2, atol=1e-6, rtol=1e-6), "mismatch (case 2)"

    # Case 3: r > 2 with t_out % 8 != 0 -> rounded-up output block + tail mask.
    xs3 = jax.random.normal(jax.random.PRNGKey(2), (2, 13, 32), jnp.float32)
    out3 = jax.block_until_ready(time_reduction(xs3, reduction_factor=3))
    ref3 = _reference(xs3, reduction_factor=3)
    assert out3.shape == ref3.shape, (out3.shape, ref3.shape)
    assert jnp.allclose(out3, ref3, atol=1e-6, rtol=1e-6), "mismatch (case 3)"

    # Case 4: bf16 input (16-row sublane alignment path), lane-dense H=128.
    xs4 = jax.random.normal(jax.random.PRNGKey(3), (2, 22, 128),
                            jnp.float32).astype(jnp.bfloat16)
    out4 = jax.block_until_ready(time_reduction(xs4, reduction_factor=2))
    ref4 = _reference(xs4.astype(jnp.float32), 2).astype(jnp.bfloat16)
    assert out4.shape == ref4.shape, (out4.shape, ref4.shape)
    assert jnp.allclose(out4.astype(jnp.float32), ref4.astype(jnp.float32),
                        atol=1e-2, rtol=1e-2), "mismatch (case 4)"

    print("KERNEL_OK")
</pallas_src>

<mosaic_0001>
module attributes {stable_mosaic.version = 11 : i64} {
  func.func @_time_reduction_kernel(%arg0: i32, %arg1: i32, %arg2: memref<1x16x32xf32, #tpu.memory_space<vmem>>, %arg3: memref<1x8x32xf32, #tpu.memory_space<vmem>>) attributes {dimension_semantics = [#tpu.dimension_semantics<parallel>, #tpu.dimension_semantics<parallel>], iteration_bounds = array<i64: 2, 1>, scalar_prefetch = 0 : i64, scratch_operands = 0 : i64, tpu.core_type = #tpu.core_type<tc>, window_params = [{transform_indices = @transform_0, window_bounds = array<i64: 1, 16, 32>}, {transform_indices = @transform_1, window_bounds = array<i64: 1, 8, 32>}]} {
    %c0_i32 = arith.constant 0 : i32
    %0 = arith.cmpi ne, %arg1, %c0_i32 : i32
    %1 = arith.extui %0 : i1 to i32
    %cst = arith.constant 5.000000e-01 : f32
    %c0_i32_0 = arith.constant 0 : i32
    %2 = arith.cmpi ne, %1, %c0_i32_0 : i32
    scf.if %2 {
      %c0 = arith.constant 0 : index
      %c0_4 = arith.constant 0 : index
      %c0_5 = arith.constant 0 : index
      %6 = vector.load %arg2[%c0, %c0_4, %c0_5] : memref<1x16x32xf32, #tpu.memory_space<vmem>>, vector<1x16x32xf32>
      %7 = vector.shape_cast %6 : vector<1x16x32xf32> to vector<1x8x2x32xf32>
      %cst_6 = arith.constant dense<0.000000e+00> : vector<1x8x32xf32>
      %8 = vector.multi_reduction <add>, %7, %cst_6 [2] : vector<1x8x2x32xf32> to vector<1x8x32xf32>
      %9 = vector.broadcast %cst : f32 to vector<1x8x32xf32>
      %10 = arith.mulf %8, %9 : vector<1x8x32xf32>
      %c0_7 = arith.constant 0 : index
      %c0_8 = arith.constant 0 : index
      %c0_9 = arith.constant 0 : index
      %11 = vector.load %arg3[%c0_7, %c0_8, %c0_9] : memref<1x8x32xf32, #tpu.memory_space<vmem>>, vector<1x8x32xf32>
      tpu.vector_store %arg3[%c0_7, %c0_8, %c0_9], %10 {strides = array<i32>} : memref<1x8x32xf32, #tpu.memory_space<vmem>>, vector<1x8x32xf32>,
    } else {
    }
    %c0_i32_1 = arith.constant 0 : i32
    %3 = arith.cmpi eq, %arg1, %c0_i32_1 : i32
    %4 = arith.extui %3 : i1 to i32
    %cst_2 = arith.constant 5.000000e-01 : f32
    %c0_i32_3 = arith.constant 0 : i32
    %5 = arith.cmpi ne, %4, %c0_i32_3 : i32
    scf.if %5 {
      %c0 = arith.constant 0 : index
      %c0_4 = arith.constant 0 : index
      %c0_5 = arith.constant 0 : index
      %6 = vector.load %arg2[%c0, %c0_4, %c0_5] : memref<1x16x32xf32, #tpu.memory_space<vmem>>, vector<1x16x32xf32>
      %c16_i32 = arith.constant 16 : i32
      %7 = arith.muli %arg1, %c16_i32 : i32
      %8 = tpu.iota {dimensions = array<i32: 1>} : vector<1x16x32xi32>
      %c7_i32 = arith.constant 7 : i32
      %9 = arith.subi %c7_i32, %7 : i32
      %10 = vector.broadcast %9 : i32 to vector<1x16x32xi32>
      %11 = arith.cmpi slt, %8, %10 : vector<1x16x32xi32>
      %cst_6 = arith.constant 0.000000e+00 : f32
      %12 = vector.broadcast %cst_6 : f32 to vector<1x16x32xf32>
      %13 = arith.select %11, %6, %12 : vector<1x16x32xi1>, vector<1x16x32xf32>
      %14 = vector.shape_cast %13 : vector<1x16x32xf32> to vector<1x8x2x32xf32>
      %cst_7 = arith.constant dense<0.000000e+00> : vector<1x8x32xf32>
      %15 = vector.multi_reduction <add>, %14, %cst_7 [2] : vector<1x8x2x32xf32> to vector<1x8x32xf32>
      %16 = vector.broadcast %cst_2 : f32 to vector<1x8x32xf32>
      %17 = arith.mulf %15, %16 : vector<1x8x32xf32>
      %c0_8 = arith.constant 0 : index
      %c0_9 = arith.constant 0 : index
      %c0_10 = arith.constant 0 : index
      %18 = vector.load %arg3[%c0_8, %c0_9, %c0_10] : memref<1x8x32xf32, #tpu.memory_space<vmem>>, vector<1x8x32xf32>
      tpu.vector_store %arg3[%c0_8, %c0_9, %c0_10], %17 {strides = array<i32>} : memref<1x8x32xf32, #tpu.memory_space<vmem>>, vector<1x8x32xf32>,
    } else {
    }
    return
  }
  func.func @transform_0(%arg0: i32, %arg1: i32) -> (i32, i32, i32) {
    %c0_i32 = arith.constant 0 : i32
    %c0_i32_0 = arith.constant 0 : i32
    return %arg0, %arg1, %c0_i32 : i32, i32, i32
  }
  func.func @transform_1(%arg0: i32, %arg1: i32) -> (i32, i32, i32) {
    %c0_i32 = arith.constant 0 : i32
    %c0_i32_0 = arith.constant 0 : i32
    return %arg0, %arg1, %c0_i32 : i32, i32, i32
  }
}

</mosaic_0001>

<bundles_post_ra>
// kernel: tpu_custom_call.1
= control target key start
LH: loop header
LB: loop body
LE: loop exit
PB: predicated region body
PF: predicated region fallthrough
CT: control target
= control target key end

     0   :  { %6 = vsyncpa [#allocation3], 0  ;;  %s810_s0 = inlined_call_operand.vmem [shape: f32[2,7,32], index: 0, kind: input, shape index: {}]   ;;  %s811_s1 = inlined_call_operand.hbm [shape: f32[2,4,32], index: 1, kind: output, shape index: {}]  }
   0x1   :  { %8 = vsyncpa [#allocation3 + $0x1], 0  ;;  %s699_s6 = smov 0   ;;  %s701_s7 = smov 0  }
   0x2   :  { %s703_s8 = smov 0   ;;  %s705_s9 = smov 0  }
   0x3   :  { %s707_s10 = smov 0   ;;  %s709_s11 = smov 0  }
   0x4 LB: > { %s539_s12 = sadd.s32 4294967295, %s682_s11   ;;  %s540_s13 = sadd.s32 4294967294, %s682_s11   ;;  %s682_s11 = sphi %s709_s11, %s14_s11   ;;  %s678_s10 = sphi %s707_s10, %s818_s10   ;;  %s674_s9 = sphi %s705_s9, %s817_s9   ;;  %s670_s8 = sphi %s703_s8, %s816_s8   ;;  %s666_s7 = sphi %s701_s7, %s815_s7   ;;  %s662_s6 = sphi %s699_s6, %s814_s6  }
   0x5   : > { %s26_s14 = sadd.s32 1, %s678_s10  ;;  %s63_s15 = sadd.s32 1, %s670_s8 }
   0x6   : > { %p28_p0 = scmp.ge.s32.totalorder %s26_s14, 2  ;;  %p73_p1 = scmp.ne.s32.totalorder %s670_s8, %s666_s7 }
   0x7   : > { %p74_p2 = scmp.eq.s32.totalorder %s539_s12, 1  ;;  %p79_p3 = scmp.ne.s32.totalorder %s666_s7, %s662_s6 }
   0x8   : > { %s820_s14 = smov (%p28_p0, %s26_s14), 0  ;;  %p80_p5 = scmp.eq.s32.totalorder %s540_s13, 1 }
   0x9   : > { %p739_p4 = por %p74_p2, %p73_p1  ;;  %s58_s17 = ssub.s32 %s678_s10, %s820_s14 }
   0xa   : > { %p543_p6 = scmp.ge.s32.totalorder %s682_s11, 1  ;;  %p61_p7 = scmp.eq.s32.totalorder %s58_s17, 0 }
   0xb   : > { %p746_p8 = por %p80_p5, %p79_p3  ;;  %p114_p9 = scmp.lt.s32.totalorder %s682_s11, 3 }
   0xc   : > { %s752_s19 = scalar_select %p61_p7, %s670_s8, %s63_s15  }
   0xd   : > { %p115_p10 = pnand %p543_p6, %p114_p9 }
   0xe   : > { %s136_s20 = sand.u32 (!%p115_p10), 1, %s666_s7   ;;  %p142_p11 = scmp.lt.s32.totalorder (!%p115_p10), %s674_s9, 1 }
   0xf   : > { %118 = sbr.rel (%p115_p10) target bundleno = 78 (0x4e), region = 24  ;;  %s544_s26 = sshll.u32 (!%p115_p10), %s136_s20, 3 }
  0x10   : > { %s138_s27 = scalar_lea.vmem (!%p115_p10), [#allocation2], %s544_s26  ;;  %s772_s28 = scalar_lea.sflag (!%p115_p10), [#allocation3], %s136_s20 }
  0x14   : > { %v317_v0 = vlaneseq  ;;  %v684_v1 = vmov 1983009808   ;;  %s143_s21 = scalar_select %p142_p11, %s674_s9, 1  ;;  %v685_v5 = vmov 0.0   ;;  %vm355_vm0 = vcmask 254976  }
  0x15   : > { %v315_v2 = vunpack.c.l.s4 %v684_v1  ;;  %v330_v6 = vcombine.high %v685_v5, %v685_v5  ;;  %vm428_vm1 = vcmask 1041409   ;;  %vm430_vm2 = vcmask 1042434  }
  0x16   : > { %v318_v3 = vshrl.u32 %v317_v0, 7  ;;  %s545_s22 = sshll.u32 %s143_s21, 3  ;;  %vm432_vm3 = vcmask 1043459   ;;  %vm434_vm4 = vcmask 1044484   ;;  %vm436_vm5 = vcmask 1045509  }
  0x17   : > { %v316_v4 = vunpack.c.0.s8 %v315_v2  ;;  %s148_s25 = scalar_lea.vmem %s810_s0, %s545_s22  ;;  %vm438_vm6 = vcmask 1046534   ;;  %vm440_vm7 = vcmask 1047559   ;;  %vm443_vm8 = vcmask 261120  }
  0x18   : > { %v546_v8 = vld [vmem:[%s148_s25] sm:$0x7f] }
  0x19   : > { %v319_v7 = vsub.s32 %v316_v4, %v318_v3  ;;  %v313_v11 = vcombine.high %v546_v8, %v546_v8 }
  0x1b   : > { %v337_v9 = vrot.slane %v685_v5, %v319_v7  ;;  %v344_v10 = vrot.slane %v330_v6, %v319_v7  ;;  %v320_v12 = vrot.slane %v546_v8, %v319_v7  ;;  %v327_v17 = vrot.slane %v313_v11, %v319_v7 }
  0x1d   : > { %v345_v13 = vcombine.high %v337_v9, %v337_v9  ;;  %v346_v14 = vcombine.high %v344_v10, %v344_v10  ;;  %v384_v15 = vsel %vm355_vm0, %v337_v9, 0.0  ;;  %v398_v16 = vsel %vm355_vm0, %v344_v10, 0.0 }
  0x1e   : > { %v328_v18 = vcombine.high %v320_v12, %v320_v12  ;;  %v356_v19 = vsel %vm355_vm0, %v320_v12, 0.0  ;;  %v385_v20 = vrot.slane %v384_v15, 4  ;;  %v399_v23 = vrot.slane %v398_v16, 4 }
  0x1f   : > { %v357_v21 = vrot.slane %v356_v19, 4  ;;  %v391_v22 = vsel %vm355_vm0, %v345_v13, 0.0  ;;  %v405_v24 = vsel %vm355_vm0, %v346_v14, 0.0  ;;  %v329_v25 = vcombine.high %v327_v17, %v327_v17 }
  0x20   : > { %v363_v26 = vsel %vm355_vm0, %v328_v18, 0.0  ;;  %v370_v27 = vsel %vm355_vm0, %v327_v17, 0.0  ;;  %v386_v28 = vadd.f32 %v385_v20, %v384_v15  ;;  %v392_v32 = vrot.slane %v391_v22, 4 }
  0x21   : > { %v358_v29 = vadd.f32 %v357_v21, %v356_v19  ;;  %v364_v30 = vrot.slane %v363_v26, 4  ;;  %v371_v31 = vrot.slane %v370_v27, 4  ;;  %v377_v33 = vsel %vm355_vm0, %v329_v25, 0.0 }
  0x22   : > { %v387_v34 = vrot.slane %v386_v28, 2  ;;  %v400_v35 = vadd.f32 %v399_v23, %v398_v16  ;;  %v406_v36 = vrot.slane %v405_v24, 4  ;;  %v378_v40 = vrot.slane %v377_v33, 4 }
  0x23   : > { %v359_v37 = vrot.slane %v358_v29, 2  ;;  %v365_v38 = vadd.f32 %v364_v30, %v363_v26  ;;  %v372_v39 = vadd.f32 %v371_v31, %v370_v27  ;;  %v393_v42 = vadd.f32 %v392_v32, %v391_v22 }
  0x24   : > { %v388_v41 = vadd.f32 %v387_v34, %v386_v28  ;;  %v401_v43 = vrot.slane %v400_v35, 2  ;;  %v407_v44 = vadd.f32 %v406_v36, %v405_v24  ;;  %v379_v48 = vadd.f32 %v378_v40, %v377_v33 }
  0x25   : > { %v360_v45 = vadd.f32 %v359_v37, %v358_v29  ;;  %v366_v46 = vrot.slane %v365_v38, 2  ;;  %v373_v47 = vrot.slane %v372_v39, 2  ;;  %v394_v50 = vrot.slane %v393_v42, 2 }
  0x26   : > { %v389_v49 = vrot.slane %v388_v41, 1  ;;  %v402_v51 = vadd.f32 %v401_v43, %v400_v35  ;;  %v408_v52 = vrot.slane %v407_v44, 2  ;;  %v380_v56 = vrot.slane %v379_v48, 2 }
  0x27   : > { %v361_v53 = vrot.slane %v360_v45, 1  ;;  %v367_v54 = vadd.f32 %v366_v46, %v365_v38  ;;  %v374_v55 = vadd.f32 %v373_v47, %v372_v39  ;;  %v395_v57 = vadd.f32 %v394_v50, %v393_v42 }
  0x28   : > { %v403_v58 = vrot.slane %v402_v51, 1  ;;  %v409_v59 = vadd.f32 %v408_v52, %v407_v44  ;;  %v381_v63 = vadd.f32 %v380_v56, %v379_v48  ;;  %v390_v0 = vadd.f32 %v389_v49, %v388_v41 }
  0x29   : > { %v362_v60 = vadd.f32 %v361_v53, %v360_v45  ;;  %v368_v61 = vrot.slane %v367_v54, 1  ;;  %v375_v62 = vrot.slane %v374_v55, 1  ;;  %v396_v1 = vrot.slane %v395_v57, 1 }
  0x2a   : > { %v410_v2 = vrot.slane %v409_v59, 1  ;;  %v382_v5 = vrot.slane %v381_v63, 1  ;;  %v404_v8 = vadd.f32 %v403_v58, %v402_v51  ;;  %v416_v13 = vmul.f32 0.5, %v390_v0 }
  0x2b   : > { %v369_v3 = vadd.f32 %v368_v61, %v367_v54  ;;  %v376_v4 = vadd.f32 %v375_v62, %v374_v55  ;;  %v412_v6 = vmul.f32 0.5, %v362_v60  ;;  %v397_v7 = vadd.f32 %v396_v1, %v395_v57 }
  0x2c   : > { %v383_v9 = vadd.f32 %v382_v5, %v381_v63  ;;  %v411_v10 = vadd.f32 %v410_v2, %v409_v59  ;;  %v418_v17 = vmul.f32 0.5, %v404_v8 }
  0x2d   : > { %v413_v11 = vmul.f32 0.5, %v369_v3  ;;  %v414_v12 = vmul.f32 0.5, %v376_v4  ;;  %v417_v15 = vmul.f32 0.5, %v397_v7 }
  0x2e   : > { %v415_v14 = vmul.f32 0.5, %v383_v9  ;;  %v419_v19 = vmul.f32 0.5, %v411_v10 }
  0x2f   : > { %v429_v16 = vsel %vm428_vm1, %v413_v11, %v412_v6 }
  0x30   : > { %v431_v18 = vsel %vm430_vm2, %v414_v12, %v429_v16 }
  0x31   : > { %v433_v20 = vsel %vm432_vm3, %v415_v14, %v431_v18 }
  0x32   : > { %v435_v21 = vsel %vm434_vm4, %v416_v13, %v433_v20  ;;  %452 = sbr.rel (!%p739_p4) target bundleno = 78 (0x4e), region = 36 }
  0x33   : > { %v437_v22 = vsel %vm436_vm5, %v417_v15, %v435_v21 }
  0x34   : > { %v439_v23 = vsel %vm438_vm6, %v418_v17, %v437_v22 }
  0x35   : > { %v441_v24 = vsel %vm440_vm7, %v419_v19, %v439_v23 }
  0x36   : > { %444 = vst.msk [vmem:[%s138_s27] sm:$0xff] %vm443_vm8, %v441_v24 }
  0x37   : > { %458 = vsyncadd %s772_s28, 64  ;;  %s548_s29 = sshll.u32 %s674_s9, 6  ;;  %s464_s30 = sshll.u32 %s138_s27, 4  ;;  %s465_s30 = int_to_ptr.vmem [resolvable:$true] %s464_s30 }
  0x38   : > { %s462_s4 = scalar_lea.hbm %s811_s1, %s548_s29  ;;  %s610_s5 = scalar_lea.vmem %s465_s30, 64 }
  0x39   : > { %p611_p12 = scmp.ne.s32.totalorder %s465_s30, %s610_s5  ;;  %s686_s12 = smov [#allocation2]  }
  0x3a   : > { %s612_s13 = sshll.u32 %s686_s12, 4  ;;  %s613_s13 = int_to_ptr.vmem [resolvable:$false] %s612_s13 }
  0x3b   : > { %s614_s15 = scalar_lea.vmem %s613_s13, 256  ;;  %p615_p13 = scmp.lt.s32.totalorder %s465_s30, %s613_s13 }
  0x3c   : > { %p616_p0 = scmp.lt.s32.totalorder %s614_s15, %s610_s5 }
  0x3e   : > { %p617_p1 = por %p616_p0, %p615_p13 }
  0x40   : > { %p618_p2 = pnand %p617_p1, %p611_p12 }
  0x42   : > { %621 = shalt.err (!%p618_p2)
}
  0x43   : > { %s622_s16 = scalar_lea.hbm %s462_s4, 64  ;;  %s624_s20 = scalar_lea.hbm %s811_s1, 128 }
  0x44   : > { %p623_p3 = scmp.ne.s32.totalorder %s462_s4, %s622_s16  ;;  %p625_p4 = scmp.lt.s32.totalorder %s462_s4, %s811_s1 }
  0x45   : > { %p626_p5 = scmp.lt.s32.totalorder %s624_s20, %s622_s16 }
  0x47   : > { %p627_p6 = por %p626_p5, %p625_p4 }
  0x49   : > { %p628_p7 = pnand %p627_p6, %p623_p3 }
  0x4b   : > { %631 = shalt.err (!%p628_p7)
}
  0x4c   : > { %s687_s23 = smov 64   ;;  %s688_s24 = smov 4  }
  0x4d   : > { %470 = dma.vmem_to_hbm [thread:$0]  %s465_s30, 64, %s462_s4, %s772_s28, %s687_s23, %s687_s23, %s688_s24  }
  0x4e PF: > { %p556_p9 = scmp.ge.s32.totalorder %s682_s11, 2  ;;  %s479_s25 = sand.u32 1, %s662_s6  }
  0x4f   : > { %s480_s26 = scalar_lea.sflag [#allocation3], %s479_s25 }
  0x50   : > { %p553_p10 = pnand %p556_p9, %p746_p8 }
  0x52   : > { %p554_p11 = pneg %p553_p10 }
  0x54   : > { %657 = dma.done.wait (%p554_p11), %s480_s26, 128  }
  0x55   : > { %659 = vsyncadd (%p554_p11), %s480_s26, 4294967168  ;;  %s14_s11 = sadd.s32 1, %s682_s11   ;;  %s814_s6 = smov %s666_s7 }
  0x56   : > { %p11_p12 = scmp.ge.s32.totalorder %s14_s11, 4   ;;  %s815_s7 = smov %s670_s8 }
  0x57   : > { %s816_s8 = smov %s752_s19  ;;  %s817_s9 = smov %s678_s10 }
  0x58   : > { %s818_s10 = smov %s820_s14  ;;  %13 = sbr.rel (!%p11_p12) target bundleno = 4 (0x4), region = 67 }
  0x5d   :  { %485 = vsyncpa [#allocation3], 1 }
  0x5e   :  { %487 = vsyncpa [#allocation3 + $0x1], 1 }

</bundles_post_ra>
